<compile_context>
chip_gen: v6e
topology: v6e:2x2x1
jax: 0.10.0
libtpu: 0.0.40
codegen_flags: <defaults>
</compile_context>

<pallas_src>
import math
from functools import partial

import numpy as np
import jax
import jax.numpy as jnp
from jax.experimental import pallas as pl
from jax.experimental.pallas import tpu as pltpu

LANE = 128


def _round_up(x, m):
    return (x + m - 1) // m * m


def _cdiv(a, b):
    return (a + b - 1) // b


def _default_hidden_dtype():
    """bf16 hidden path on bf16-capable VPUs (v6e / v7x); f32 elsewhere (v5e, v4, ...)."""
    try:
        kind = jax.devices()[0].device_kind.lower()
    except Exception:
        return jnp.float32
    if any(tag in kind for tag in ("v6", "v7", "tpu7")):
        return jnp.bfloat16
    return jnp.float32


def _mlp_kernel(x_ref, w1_ref, b1_ref, w2_ref, b2_ref, o_ref):
    """One batch tile; batch on the lane axis.

    x_ref : (IN, TB)   input tile (batch on lanes), compute dtype
    w1_ref: (Hp, IN)   layer-1 weight, hidden zero-padded to Hp, compute dtype
    b1_ref: (Hp, 1)    layer-1 bias, compute dtype
    w2_ref: (Hp, 1)    layer-2 weight (transposed), compute dtype
    b2_ref: (1,) SMEM  layer-2 bias (f32 scalar)
    o_ref : (1, TB)    lane-dense f32 output row
    """
    x = x_ref[...]                                   # (IN, TB)
    w1 = w1_ref[...]                                 # (Hp, IN)

    # Layer 1: K = IN = 2 -> VPU broadcast FMAs (MXU would be <2% utilized).
    h = b1_ref[...] + w1[:, 0:1] * x[0:1, :]         # (Hp, TB)
    for k in range(1, x.shape[0]):                   # statically unrolled (IN = 2)
        h = h + w1[:, k:k + 1] * x[k:k + 1, :]
    h = jnp.maximum(h, 0.0)                          # ReLU (compute dtype)

    # Layer 2: elementwise multiply in compute dtype, accumulate the sum in f32.
    p = w2_ref[...] * h                              # (Hp, TB)
    z = jnp.sum(p.astype(jnp.float32), axis=0, keepdims=True) + b2_ref[0]   # (1, TB)

    # Numerically stable sigmoid (== jax.nn.sigmoid); exp runs on the EUP.
    e = jnp.exp(-jnp.abs(z))
    s = e / (1.0 + e)                                # sigmoid(-|z|)
    o_ref[...] = jnp.where(z >= 0.0, 1.0 - s, s)


@partial(jax.jit, static_argnames=("tile_b", "h_pad", "b_pad", "compute_dtype"))
def _forward_impl(x, w1, b1, w2, b2, *, tile_b, h_pad, b_pad, compute_dtype):
    B, IN = x.shape
    H = w1.shape[0]
    cdt = compute_dtype

    # Lane-friendly relayout + zero padding; fused by XLA under this jit.
    x_t = jnp.pad(x.astype(cdt).T, ((0, 0), (0, b_pad - B)))            # (IN, B_pad)
    w1_p = jnp.pad(w1.astype(cdt), ((0, h_pad - H), (0, 0)))            # (Hp, IN)
    b1_p = jnp.pad(b1.astype(cdt), (0, h_pad - H)).reshape(h_pad, 1)    # (Hp, 1)
    w2_p = jnp.pad(w2[0, :].astype(cdt), (0, h_pad - H)).reshape(h_pad, 1)
    b2_s = b2.reshape((1,)).astype(jnp.float32)                         # SMEM scalar

    grid = (_cdiv(b_pad, tile_b),)   # ragged last block allowed (Pallas masks OOB)

    out = pl.pallas_call(
        _mlp_kernel,
        out_shape=jax.ShapeDtypeStruct((1, b_pad), jnp.float32),
        grid_spec=pltpu.PrefetchScalarGridSpec(
            num_scalar_prefetch=0,
            grid=grid,
            in_specs=[
                pl.BlockSpec((IN, tile_b), lambda i: (0, i)),          # x^T tile
                pl.BlockSpec((h_pad, IN), lambda i: (0, 0)),           # W1 (resident)
                pl.BlockSpec((h_pad, 1), lambda i: (0, 0)),            # b1
                pl.BlockSpec((h_pad, 1), lambda i: (0, 0)),            # W2^T
                pl.BlockSpec(memory_space=pltpu.MemorySpace.SMEM),     # b2 scalar
            ],
            out_specs=pl.BlockSpec((1, tile_b), lambda i: (0, i)),     # lane-dense
        ),
        compiler_params=pltpu.CompilerParams(
            dimension_semantics=("parallel",),
            vmem_limit_bytes=32 * 1024 * 1024,
        ),
    )(x_t, w1_p, b1_p, w2_p, b2_s)

    return out[0, :B].reshape(B, 1)


def robust_network_forward(x, w1, b1, w2, b2, *, tile_b=None, compute_dtype=None):
    """Fused forward pass of RobustNetwork.

    Args (PyTorch nn.Linear layout):
      x : (B, IN) float32
      w1: (H, IN), b1: (H,)
      w2: (OUT, H), b2: (OUT,)  with OUT == 1
    Returns (B, OUT) float32 = sigmoid(relu(x @ w1.T + b1) @ w2.T + b2)
    """
    B, IN = x.shape
    H = w1.shape[0]
    OUT = w2.shape[0]
    assert OUT == 1, "kernel is specialized to a scalar output head"
    assert w1.shape[1] == IN and w2.shape[1] == H

    if compute_dtype is None:
        compute_dtype = _default_hidden_dtype()
    compute_dtype = np.dtype(compute_dtype)

    # Hidden dim sits on the sublane axis -> pad to the sublane granule only.
    sub = 16 if compute_dtype == np.dtype(jnp.bfloat16) else 8
    h_pad = _round_up(H, sub)

    # Batch padded to 128 lanes only; tile sized to amortize per-step overhead
    # while keeping >= 2 grid steps when the batch allows it (v7x: 2 TCs).
    b_pad = _round_up(B, LANE)
    if tile_b is None:
        tile_b = 8192
        if b_pad >= 2 * LANE:
            tile_b = min(tile_b, _round_up(_cdiv(b_pad, 2), LANE))
    tile_b = max(LANE, _round_up(min(int(tile_b), b_pad), LANE))

    return _forward_impl(x, w1, b1, w2, b2, tile_b=tile_b, h_pad=h_pad,
                         b_pad=b_pad, compute_dtype=compute_dtype)


def init_params(key, nodes=(2, 100, 1)):
    """PyTorch nn.Linear-style init: U(-1/sqrt(fan_in), 1/sqrt(fan_in)).

    Returns params in PyTorch layout: w (out_features, in_features), b (out_features,).
    """
    params = []
    keys = jax.random.split(key, 2 * (len(nodes) - 1))
    for k, (fan_in, fan_out) in enumerate(zip(nodes[:-1], nodes[1:])):
        bound = 1.0 / math.sqrt(fan_in)
        w = jax.random.uniform(keys[2 * k], (fan_out, fan_in),
                               minval=-bound, maxval=bound, dtype=jnp.float32)
        b = jax.random.uniform(keys[2 * k + 1], (fan_out,),
                               minval=-bound, maxval=bound, dtype=jnp.float32)
        params.append((w, b))
    return params


def _reference(x, w1, b1, w2, b2):
    return jax.nn.sigmoid(jnp.maximum(x @ w1.T + b1, 0.0) @ w2.T + b2)


if __name__ == "__main__":
    key = jax.random.PRNGKey(0)
    k_x, k_x2, k_p = jax.random.split(key, 3)

    IN, HID, OUT = 2, 100, 1
    (w1, b1), (w2, b2) = init_params(k_p, nodes=(IN, HID, OUT))

    # Tolerance depends on which hidden-path dtype the current chip auto-selects.
    auto_dt = np.dtype(_default_hidden_dtype())
    tol = 2e-2 if auto_dt == np.dtype(jnp.bfloat16) else 1e-5

    # Small deterministic example (matches the module's nodes=[2, 100, 1]).
    B = 8
    x = jax.random.normal(k_x, (B, IN), dtype=jnp.float32)
    ref = _reference(x, w1, b1, w2, b2)
    y = jax.block_until_ready(robust_network_forward(x, w1, b1, w2, b2))
    assert y.shape == (B, OUT)
    assert jnp.allclose(y, ref, atol=tol, rtol=tol)

    # Non-multiple-of-128 batch: exercises 128-lane padding, a multi-step grid
    # and the ragged last block.
    B2 = 333
    x2 = jax.random.normal(k_x2, (B2, IN), dtype=jnp.float32)
    ref2 = _reference(x2, w1, b1, w2, b2)
    y2 = jax.block_until_ready(robust_network_forward(x2, w1, b1, w2, b2))
    assert y2.shape == (B2, OUT)
    assert jnp.allclose(y2, ref2, atol=tol, rtol=tol)

    # Explicit f32 path: exact on every chip (also what v5e runs by default).
    y32 = jax.block_until_ready(
        robust_network_forward(x2, w1, b1, w2, b2, compute_dtype=jnp.float32))
    assert jnp.allclose(y32, ref2, atol=1e-5, rtol=1e-5)

    print("KERNEL_OK")
</pallas_src>

<mosaic_0001>
module attributes {stable_mosaic.version = 11 : i64} {
  func.func @_mlp_kernel(%arg0: i32, %arg1: memref<2x128xf32, #tpu.memory_space<vmem>>, %arg2: memref<104x2xf32, #tpu.memory_space<vmem>>, %arg3: memref<104x1xf32, #tpu.memory_space<vmem>>, %arg4: memref<104x1xf32, #tpu.memory_space<vmem>>, %arg5: memref<1xf32, #tpu.memory_space<smem>>, %arg6: memref<1x128xf32, #tpu.memory_space<vmem>>) attributes {dimension_semantics = [#tpu.dimension_semantics<parallel>], iteration_bounds = array<i64: 1>, scalar_prefetch = 0 : i64, scratch_operands = 0 : i64, tpu.core_type = #tpu.core_type<tc>, window_params = [{transform_indices = @transform_0, window_bounds = array<i64: 2, 128>}, {pipeline_mode = #tpu.pipeline_mode<synchronous>, transform_indices = @transform_1, window_bounds = array<i64: 104, 2>}, {pipeline_mode = #tpu.pipeline_mode<synchronous>, transform_indices = @transform_2, window_bounds = array<i64: 104, 1>}, {pipeline_mode = #tpu.pipeline_mode<synchronous>, transform_indices = @transform_3, window_bounds = array<i64: 104, 1>}, {transform_indices = @transform_4, window_bounds = array<i64: 1>}, {transform_indices = @transform_5, window_bounds = array<i64: 1, 128>}]} {
    %c0 = arith.constant 0 : index
    %c0_0 = arith.constant 0 : index
    %0 = vector.load %arg1[%c0, %c0_0] : memref<2x128xf32, #tpu.memory_space<vmem>>, vector<2x128xf32>
    %c0_1 = arith.constant 0 : index
    %c0_2 = arith.constant 0 : index
    %1 = vector.load %arg2[%c0_1, %c0_2] : memref<104x2xf32, #tpu.memory_space<vmem>>, vector<104x2xf32>
    %c0_3 = arith.constant 0 : index
    %c0_4 = arith.constant 0 : index
    %2 = vector.load %arg3[%c0_3, %c0_4] : memref<104x1xf32, #tpu.memory_space<vmem>>, vector<104x1xf32>
    %3 = vector.extract_strided_slice %1 {offsets = [0, 0], sizes = [104, 1], strides = [1, 1]} : vector<104x2xf32> to vector<104x1xf32>
    %4 = vector.extract_strided_slice %0 {offsets = [0, 0], sizes = [1, 128], strides = [1, 1]} : vector<2x128xf32> to vector<1x128xf32>
    %5 = vector.broadcast %3 : vector<104x1xf32> to vector<104x128xf32>
    %6 = vector.broadcast %4 : vector<1x128xf32> to vector<104x128xf32>
    %7 = arith.mulf %5, %6 : vector<104x128xf32>
    %8 = vector.broadcast %2 : vector<104x1xf32> to vector<104x128xf32>
    %9 = arith.addf %8, %7 : vector<104x128xf32>
    %10 = vector.extract_strided_slice %1 {offsets = [0, 1], sizes = [104, 1], strides = [1, 1]} : vector<104x2xf32> to vector<104x1xf32>
    %11 = vector.extract_strided_slice %0 {offsets = [1, 0], sizes = [1, 128], strides = [1, 1]} : vector<2x128xf32> to vector<1x128xf32>
    %12 = vector.broadcast %10 : vector<104x1xf32> to vector<104x128xf32>
    %13 = vector.broadcast %11 : vector<1x128xf32> to vector<104x128xf32>
    %14 = arith.mulf %12, %13 : vector<104x128xf32>
    %15 = arith.addf %9, %14 : vector<104x128xf32>
    %cst = arith.constant 0.000000e+00 : f32
    %16 = vector.broadcast %cst : f32 to vector<104x128xf32>
    %17 = arith.maximumf %15, %16 : vector<104x128xf32>
    %c0_5 = arith.constant 0 : index
    %c0_6 = arith.constant 0 : index
    %18 = vector.load %arg4[%c0_5, %c0_6] : memref<104x1xf32, #tpu.memory_space<vmem>>, vector<104x1xf32>
    %19 = vector.broadcast %18 : vector<104x1xf32> to vector<104x128xf32>
    %20 = arith.mulf %19, %17 : vector<104x128xf32>
    %cst_7 = arith.constant dense<0.000000e+00> : vector<128xf32>
    %21 = vector.multi_reduction <add>, %20, %cst_7 [0] : vector<104x128xf32> to vector<128xf32>
    %22 = vector.shape_cast %21 : vector<128xf32> to vector<1x128xf32>
    %c0_8 = arith.constant 0 : index
    %23 = memref.load %arg5[%c0_8] : memref<1xf32, #tpu.memory_space<smem>>
    %24 = vector.broadcast %23 : f32 to vector<1x128xf32>
    %25 = arith.addf %22, %24 : vector<1x128xf32>
    %26 = math.absf %25 : vector<1x128xf32>
    %cst_9 = arith.constant 0.000000e+00 : f32
    %27 = vector.broadcast %cst_9 : f32 to vector<1x128xf32>
    %28 = arith.subf %27, %26 : vector<1x128xf32>
    %29 = math.exp %28 : vector<1x128xf32>
    %cst_10 = arith.constant 1.000000e+00 : f32
    %30 = vector.broadcast %cst_10 : f32 to vector<1x128xf32>
    %31 = arith.addf %30, %29 : vector<1x128xf32>
    %32 = arith.divf %29, %31 : vector<1x128xf32>
    %cst_11 = arith.constant 0.000000e+00 : f32
    %33 = vector.broadcast %cst_11 : f32 to vector<1x128xf32>
    %34 = arith.cmpf oge, %25, %33 : vector<1x128xf32>
    %cst_12 = arith.constant 1.000000e+00 : f32
    %35 = vector.broadcast %cst_12 : f32 to vector<1x128xf32>
    %36 = arith.subf %35, %32 : vector<1x128xf32>
    %37 = arith.select %34, %36, %32 : vector<1x128xi1>, vector<1x128xf32>
    %c0_13 = arith.constant 0 : index
    %c0_14 = arith.constant 0 : index
    %38 = vector.load %arg6[%c0_13, %c0_14] : memref<1x128xf32, #tpu.memory_space<vmem>>, vector<1x128xf32>
    tpu.vector_store %arg6[%c0_13, %c0_14], %37 {strides = array<i32>} : memref<1x128xf32, #tpu.memory_space<vmem>>, vector<1x128xf32>,
    return
  }
  func.func @transform_0(%arg0: i32) -> (i32, i32) {
    %c0_i32 = arith.constant 0 : i32
    %c0_i32_0 = arith.constant 0 : i32
    return %c0_i32, %arg0 : i32, i32
  }
  func.func @transform_1(%arg0: i32) -> (i32, i32) {
    %c0_i32 = arith.constant 0 : i32
    %c0_i32_0 = arith.constant 0 : i32
    %c0_i32_1 = arith.constant 0 : i32
    return %c0_i32, %c0_i32_0 : i32, i32
  }
  func.func @transform_2(%arg0: i32) -> (i32, i32) {
    %c0_i32 = arith.constant 0 : i32
    %c0_i32_0 = arith.constant 0 : i32
    %c0_i32_1 = arith.constant 0 : i32
    return %c0_i32, %c0_i32_0 : i32, i32
  }
  func.func @transform_3(%arg0: i32) -> (i32, i32) {
    %c0_i32 = arith.constant 0 : i32
    %c0_i32_0 = arith.constant 0 : i32
    %c0_i32_1 = arith.constant 0 : i32
    return %c0_i32, %c0_i32_0 : i32, i32
  }
  func.func @transform_4(%arg0: i32) -> i32 {
    %c0_i32 = arith.constant 0 : i32
    %c0_i32_0 = arith.constant 0 : i32
    return %c0_i32 : i32
  }
  func.func @transform_5(%arg0: i32) -> (i32, i32) {
    %c0_i32 = arith.constant 0 : i32
    %c0_i32_0 = arith.constant 0 : i32
    return %c0_i32, %arg0 : i32, i32
  }
}

</mosaic_0001>

<bundles_post_ra>
// kernel: _forward_impl.1
= control target key start
LH: loop header
LB: loop body
LE: loop exit
PB: predicated region body
PF: predicated region fallthrough
CT: control target
= control target key end

     0   :  { %v452_v0 = vmov 0   ;;  %v453_v16 = vmov 1   ;;  %v113_v62 = vlaneseq  ;;  %s696_s1 = inlined_call_operand.vmem [shape: f32[104,2], index: 1, kind: input, shape index: {}]   ;;  %s697_s2 = inlined_call_operand.vmem [shape: f32[104,1], index: 2, kind: input, shape index: {}]   ;;  %s698_s3 = inlined_call_operand.vmem [shape: f32[104,1], index: 3, kind: input, shape index: {}]   ;;  %s699_s0 = inlined_call_operand.vmem [shape: f32[2,128], index: 0, kind: input, shape index: {}]   ;;  %s700_s4 = inlined_call_operand.<no memory space> [shape: f32[1], index: 4, kind: input, shape index: {}]   ;;  %s701_s5 = inlined_call_operand.vmem [shape: f32[1,128], index: 5, kind: output, shape index: {}]  }
   0x1   :  { %433 = vset.pattern.permute.xlu1 %v452_v0  ;;  %432 = vset.pattern.permute.xlu0 %v452_v0  ;;  %v24_v1 = vld [vmem:[%s696_s1 + $0x10] sm:$0xff]  ;;  %v22_v2 = vld [vmem:[%s696_s1] sm:$0xff]  ;;  %v25_v3 = vld [vmem:[%s696_s1 + $0x18] sm:$0xff] }
   0x2   :  { %60 = vperm.xlu1 %433, %v24_v1   ;;  %50 = vperm.xlu0 %432, %v22_v2   ;;  %v23_v4 = vld [vmem:[%s696_s1 + $0x8] sm:$0xff]  ;;  %v26_v6 = vld [vmem:[%s696_s1 + $0x20] sm:$0xff]  ;;  %v29_v7 = vld [vmem:[%s696_s1 + $0x38] sm:$0xff] }
   0x3   :  { %v27_v5 = vld [vmem:[%s696_s1 + $0x28] sm:$0xff]  ;;  %v28_v8 = vld [vmem:[%s696_s1 + $0x30] sm:$0xff]  ;;  %v30_v10 = vld [vmem:[%s696_s1 + $0x40] sm:$0xff] }
   0x4   :  { %v513_v9 = vld [vmem:[%s696_s1 + $0x48] sm:$0xff]  ;;  %v33_v11 = vld [vmem:[%s696_s1 + $0x58] sm:$0xff]  ;;  %v525_v12 = vld [vmem:[%s696_s1 + $0x50] sm:$0xff] }
   0x5   :  { %v35_v13 = vld [vmem:[%s697_s2] sm:$0xff]  ;;  %v36_v15 = vld [vmem:[%s697_s2 + $0x8] sm:$0xff]  ;;  %v38_v17 = vld [vmem:[%s697_s2 + $0x18] sm:$0xff] }
   0x6   :  { %65 = vperm.xlu1 %433, %v25_v3   ;;  %55 = vperm.xlu0 %432, %v23_v4   ;;  %v34_v14 = vld [vmem:[%s696_s1 + $0x60] sm:$0xff]  ;;  %v37_v18 = vld [vmem:[%s697_s2 + $0x10] sm:$0xff]  ;;  %v40_v19 = vld [vmem:[%s697_s2 + $0x28] sm:$0xff] }
   0x7   :  { %v41_v20 = vld [vmem:[%s697_s2 + $0x30] sm:$0xff]  ;;  %v306_v21 = vld [vmem:[%s698_s3 + $0x18] sm:$0xff]  ;;  %v39_v22 = vld [vmem:[%s697_s2 + $0x20] sm:$0xff] }
   0x8   :  { %v44_v23 = vld [vmem:[%s697_s2 + $0x48] sm:$0xff]  ;;  %v303_v24 = vld [vmem:[%s698_s3] sm:$0xff]  ;;  %v45_v25 = vld [vmem:[%s697_s2 + $0x50] sm:$0xff] }
   0x9   :  { %v304_v26 = vld [vmem:[%s698_s3 + $0x8] sm:$0xff]  ;;  %v310_v27 = vld [vmem:[%s698_s3 + $0x38] sm:$0xff]  ;;  %v305_v28 = vld [vmem:[%s698_s3 + $0x10] sm:$0xff] }
   0xa   :  { %75 = vperm.xlu1 %433, %v27_v5   ;;  %70 = vperm.xlu0 %432, %v26_v6   ;;  %v42_v29 = vld [vmem:[%s697_s2 + $0x38] sm:$0xff]  ;;  %v307_v30 = vld [vmem:[%s698_s3 + $0x20] sm:$0xff]  ;;  %v313_v32 = vld [vmem:[%s698_s3 + $0x50] sm:$0xff] }
   0xb   :  { %v43_v31 = vld [vmem:[%s697_s2 + $0x40] sm:$0xff]  ;;  %v308_v33 = vld [vmem:[%s698_s3 + $0x28] sm:$0xff]  ;;  %v309_v34 = vld [vmem:[%s698_s3 + $0x30] sm:$0xff] }
   0xc   :  { %v46_v35 = vld [vmem:[%s697_s2 + $0x58] sm:$0xff]  ;;  %v311_v36 = vld [vmem:[%s698_s3 + $0x40] sm:$0xff]  ;;  %v312_v38 = vld [vmem:[%s698_s3 + $0x48] sm:$0xff] }
   0xd   :  { %v47_v37 = vld [vmem:[%s697_s2 + $0x60] sm:$0xff]  ;;  %v314_v39 = vld [vmem:[%s698_s3 + $0x58] sm:$0xff] }
   0xe   :  { %85 = vperm.xlu1 %433, %v29_v7   ;;  %80 = vperm.xlu0 %432, %v28_v8   ;;  %v315_v42 = vld [vmem:[%s698_s3 + $0x60] sm:$0xff] }
  0x12   :  { %95 = vperm.xlu1 %433, %v513_v9   ;;  %90 = vperm.xlu0 %432, %v30_v10  }
  0x16   :  { %105 = vperm.xlu1 %433, %v33_v11   ;;  %100 = vperm.xlu0 %432, %v525_v12  }
  0x1a   :  { %132 = vperm.xlu1 %433, %v35_v13   ;;  %110 = vperm.xlu0 %432, %v34_v14  }
  0x1e   :  { %434 = vset.pattern.permute.xlu1 %v453_v16  ;;  %137 = vperm.xlu0 %432, %v36_v15  }
  0x1f   :  { %209 = vperm.xlu1 %434, %v22_v2  }
  0x22   :  { %147 = vperm.xlu0 %432, %v38_v17  }
  0x23   :  { %435 = vset.pattern.permute.xlu1 %v452_v0 }
  0x24   :  { %142 = vperm.xlu1 %435, %v37_v18  }
  0x26   :  { %157 = vperm.xlu0 %432, %v40_v19  }
  0x28   :  { %436 = vset.pattern.permute.xlu1 %v453_v16 }
  0x29   :  { %217 = vperm.xlu1 %436, %v24_v1   ;;  %v114_v1 = vshrl.u32 %v113_v62, 7 }
  0x2a   :  { %162 = vperm.xlu0 %432, %v41_v20  }
  0x2d   :  { %221 = vperm.xlu1 %436, %v25_v3  }
  0x2e   :  { %333 = vperm.xlu0 %432, %v306_v21  }
  0x31   :  { %437 = vset.pattern.permute.xlu1 %v452_v0 }
  0x32   :  { %152 = vperm.xlu1 %437, %v39_v22   ;;  %177 = vperm.xlu0 %432, %v44_v23  }
  0x36   :  { %318 = vperm.xlu1 %437, %v303_v24   ;;  %182 = vperm.xlu0 %432, %v45_v25  }
  0x3a   :  { %323 = vperm.xlu1 %437, %v304_v26   ;;  %353 = vperm.xlu0 %432, %v310_v27  }
  0x3e   :  { %438 = vset.pattern.permute.xlu1 %v453_v16  ;;  %445 = vset.pattern.permute.xlu0 %v453_v16 }
  0x3f   :  { %229 = vperm.xlu1 %438, %v27_v5   ;;  %213 = vperm.xlu0 %445, %v23_v4   ;;  %v115_v4 = vsub.s32 0, %v114_v1  ;;  %v262_v5 = vsub.s32 1, %v114_v1 }
  0x43   :  { %439 = vset.pattern.permute.xlu1 %v452_v0  ;;  %225 = vperm.xlu0 %445, %v26_v6   ;;  %v21_v6 = vld [vmem:[%s699_s0] sm:$0x3] }
  0x44   :  { %328 = vperm.xlu1 %439, %v305_v28  }
  0x47   :  { %237 = vperm.xlu0 %445, %v29_v7  }
  0x48   :  { %440 = vset.pattern.permute.xlu1 %v453_v16 }
  0x49   :  { %233 = vperm.xlu1 %440, %v28_v8  }
  0x4b   :  { %241 = vperm.xlu0 %445, %v30_v10   ;;  %v647_v10 = vrot.slane %v21_v6, %v262_v5 }
  0x4d   :  { %441 = vset.pattern.permute.xlu1 %v452_v0 }
  0x4e   :  { %167 = vperm.xlu1 %441, %v42_v29  }
  0x4f   :  { %253 = vperm.xlu0 %445, %v33_v11  }
  0x52   :  { %338 = vperm.xlu1 %441, %v307_v30  }
  0x53   :  { %257 = vperm.xlu0 %445, %v34_v14  }
  0x56   :  { %172 = vperm.xlu1 %441, %v43_v31  }
  0x57   :  { %447 = vset.pattern.permute.xlu0 %v452_v0 }
  0x58   :  { %368 = vperm.xlu0 %447, %v313_v32  }
  0x5a   :  { %343 = vperm.xlu1 %441, %v308_v33  }
  0x5e   :  { %442 = vset.pattern.permute.xlu1 %v453_v16 }
  0x5f   :  { %245 = vperm.xlu1 %442, %v513_v9   ;;  %v645_v9 = vrot.slane %v21_v6, %v115_v4 }
  0x63   :  { %443 = vset.pattern.permute.xlu1 %v452_v0 }
  0x64   :  { %348 = vperm.xlu1 %443, %v309_v34  }
  0x68   :  { %444 = vset.pattern.permute.xlu1 %v453_v16 }
  0x69   :  { %249 = vperm.xlu1 %444, %v525_v12  }
  0x6d   :  { %446 = vset.pattern.permute.xlu1 %v452_v0 }
  0x6e   :  { %187 = vperm.xlu1 %446, %v46_v35  }
  0x72   :  { %358 = vperm.xlu1 %446, %v311_v36  }
  0x76   :  { %192 = vperm.xlu1 %446, %v47_v37  }
  0x7a   :  { %363 = vperm.xlu1 %446, %v312_v38  }
  0x7d   :  { %v61_v40 = vpop.permute.xlu1 %60  ;;  %v51_v41 = vpop.permute.xlu0 %50 }
  0x7e   :  { %373 = vperm.xlu1 %446, %v314_v39   ;;  %v117_v11 = vmul.f32 %v645_v9, %v51_v41  ;;  %v119_v16 = vmul.f32 %v645_v9, %v61_v40 }
  0x81   :  { %v66_v43 = vpop.permute.xlu1 %65  ;;  %v56_v44 = vpop.permute.xlu0 %55 }
  0x82   :  { %378 = vperm.xlu1 %446, %v315_v42   ;;  %v118_v14 = vmul.f32 %v645_v9, %v56_v44  ;;  %v120_v17 = vmul.f32 %v645_v9, %v66_v43 }
  0x85   :  { %v618_v45 = vpop.permute.xlu1 %75  ;;  %v620_v46 = vpop.permute.xlu0 %70 }
  0x89   :  { %v622_v47 = vpop.permute.xlu1 %85  ;;  %v624_v48 = vpop.permute.xlu0 %80 }
  0x8d   :  { %v626_v49 = vpop.permute.xlu1 %95  ;;  %v628_v50 = vpop.permute.xlu0 %90 }
  0x91   :  { %v630_v51 = vpop.permute.xlu1 %105  ;;  %v632_v52 = vpop.permute.xlu0 %100 }
  0x95   :  { %v133_v53 = vpop.permute.xlu1 %132  ;;  %v634_v54 = vpop.permute.xlu0 %110 }
  0x96   :  { %v195_v18 = vadd.f32 %v133_v53, %v117_v11  ;;  %v121_v53 = vmul.f32 %v645_v9, %v620_v46  ;;  %v124_v46 = vmul.f32 %v645_v9, %v622_v47  ;;  %v123_v11 = vmul.f32 %v645_v9, %v624_v48 }
  0x99   :  { %v138_v55 = vpop.permute.xlu0 %137 }
  0x9a   :  { %v210_v56 = vpop.permute.xlu1 %209  ;;  %v196_v21 = vadd.f32 %v138_v55, %v118_v14 }
  0x9b   :  { %v264_v15 = vmul.f32 %v647_v10, %v210_v56 }
  0x9d   :  { %v148_v57 = vpop.permute.xlu0 %147  ;;  %v277_v24 = vadd.f32 %v264_v15, %v195_v18 }
  0x9e   :  { %v198_v25 = vadd.f32 %v148_v57, %v120_v17 }
  0x9f   :  { %v143_v58 = vpop.permute.xlu1 %142  ;;  %v290_v31 = vmax.f32 %v277_v24, 0.0 }
  0xa0   :  { %v197_v26 = vadd.f32 %v143_v58, %v119_v16  ;;  %v122_v58 = vmul.f32 %v645_v9, %v618_v45 }
  0xa1   :  { %v158_v59 = vpop.permute.xlu0 %157 }
  0xa2   :  { %v200_v1 = vadd.f32 %v158_v59, %v122_v58 }
  0xa4   :  { %v218_v60 = vpop.permute.xlu1 %217 }
  0xa5   :  { %v636_v61 = vpop.permute.xlu0 %162  ;;  %v266_v19 = vmul.f32 %v647_v10, %v218_v60 }
  0xa6   :  { %v201_v17 = vadd.f32 %v636_v61, %v123_v11 }
  0xa7   :  { %v279_v28 = vadd.f32 %v266_v19, %v197_v26 }
  0xa8   :  { %v222_v63 = vpop.permute.xlu1 %221 }
  0xa9   :  { %v334_v0 = vpop.permute.xlu0 %333  ;;  %v267_v20 = vmul.f32 %v647_v10, %v222_v63  ;;  %v292_v37 = vmax.f32 %v279_v28, 0.0 }
  0xab   :  { %v280_v29 = vadd.f32 %v267_v20, %v198_v25 }
  0xad   :  { %v153_v2 = vpop.permute.xlu1 %152  ;;  %v638_v3 = vpop.permute.xlu0 %177  ;;  %v293_v34 = vmax.f32 %v280_v29, 0.0  ;;  %v125_v29 = vmul.f32 %v645_v9, %v628_v50  ;;  %v128_v50 = vmul.f32 %v645_v9, %v630_v51 }
  0xae   :  { %v199_v57 = vadd.f32 %v153_v2, %v121_v53 }
  0xaf   :  { %v384_v41 = vmul.f32 %v334_v0, %v293_v34  ;;  %v127_v34 = vmul.f32 %v645_v9, %v632_v52  ;;  %v129_v52 = vmul.f32 %v645_v9, %v634_v54 }
  0xb1   :  { %v319_v7 = vpop.permute.xlu1 %318  ;;  %v643_v8 = vpop.permute.xlu0 %182 }
  0xb2   :  { %v381_v35 = vmul.f32 %v319_v7, %v290_v31 }
  0xb5   :  { %v324_v12 = vpop.permute.xlu1 %323  ;;  %v650_v13 = vpop.permute.xlu0 %353 }
  0xba   :  { %v230_v22 = vpop.permute.xlu1 %229  ;;  %v214_v23 = vpop.permute.xlu0 %213 }
  0xbb   :  { %v265_v27 = vmul.f32 %v647_v10, %v214_v23  ;;  %v269_v60 = vmul.f32 %v647_v10, %v230_v22 }
  0xbd   :  { %v278_v30 = vadd.f32 %v265_v27, %v196_v21  ;;  %v282_v4 = vadd.f32 %v269_v60, %v200_v1 }
  0xbe   :  { %v226_v42 = vpop.permute.xlu0 %225 }
  0xbf   :  { %v291_v32 = vmax.f32 %v278_v30, 0.0  ;;  %v329_v33 = vpop.permute.xlu1 %328  ;;  %v268_v55 = vmul.f32 %v647_v10, %v226_v42  ;;  %v295_v2 = vmax.f32 %v282_v4, 0.0 }
  0xc0   :  { %v383_v38 = vmul.f32 %v329_v33, %v292_v37 }
  0xc1   :  { %v382_v36 = vmul.f32 %v324_v12, %v291_v32  ;;  %v281_v62 = vadd.f32 %v268_v55, %v199_v57  ;;  %v126_v32 = vmul.f32 %v645_v9, %v626_v49 }
  0xc2   :  { %v238_v6 = vpop.permute.xlu0 %237 }
  0xc3   :  { %v394_v39 = vadd.f32 %v382_v36, %v381_v35  ;;  %v294_v0 = vmax.f32 %v281_v62, 0.0  ;;  %v271_v12 = vmul.f32 %v647_v10, %v238_v6 }
  0xc4   :  { %v234_v40 = vpop.permute.xlu1 %233 }
  0xc5   :  { %v395_v43 = vadd.f32 %v394_v39, %v383_v38  ;;  %v270_v14 = vmul.f32 %v647_v10, %v234_v40  ;;  %v204_v38 = vadd.f32 %v638_v3, %v126_v32  ;;  %v205_v39 = vadd.f32 %v643_v8, %v127_v34 }
  0xc6   :  { %v242_v28 = vpop.permute.xlu0 %241 }
  0xc7   :  { %v396_v44 = vadd.f32 %v395_v43, %v384_v41  ;;  %v283_v19 = vadd.f32 %v270_v14, %v201_v17  ;;  %v272_v61 = vmul.f32 %v647_v10, %v242_v28 }
  0xc9   :  { %v168_v56 = vpop.permute.xlu1 %167  ;;  %v296_v47 = vmax.f32 %v283_v19, 0.0 }
  0xca   :  { %v202_v15 = vadd.f32 %v168_v56, %v124_v46  ;;  %v254_v33 = vpop.permute.xlu0 %253 }
  0xcb   :  { %v275_v53 = vmul.f32 %v647_v10, %v254_v33 }
  0xcc   :  { %v284_v20 = vadd.f32 %v271_v12, %v202_v15 }
  0xcd   :  { %v339_v63 = vpop.permute.xlu1 %338 }
  0xce   :  { %v385_v7 = vmul.f32 %v339_v63, %v294_v0  ;;  %v297_v22 = vmax.f32 %v284_v20, 0.0  ;;  %v258_v43 = vpop.permute.xlu0 %257 }
  0xcf   :  { %v276_v8 = vmul.f32 %v647_v10, %v258_v43 }
  0xd0   :  { %v397_v16 = vadd.f32 %v396_v44, %v385_v7  ;;  %v388_v48 = vmul.f32 %v650_v13, %v297_v22 }
  0xd1   :  { %v173_v5 = vpop.permute.xlu1 %172 }
  0xd2   :  { %v203_v30 = vadd.f32 %v173_v5, %v125_v29 }
  0xd3   :  { %v369_v60 = vpop.permute.xlu0 %368 }
  0xd4   :  { %v285_v35 = vadd.f32 %v272_v61, %v203_v30 }
  0xd5   :  { %v344_v45 = vpop.permute.xlu1 %343 }
  0xd6   :  { %v386_v59 = vmul.f32 %v344_v45, %v295_v2  ;;  %v298_v42 = vmax.f32 %v285_v35, 0.0 }
  0xd8   :  { %v398_v18 = vadd.f32 %v397_v16, %v386_v59 }
  0xda   :  { %v246_v21 = vpop.permute.xlu1 %245 }
  0xdb   :  { %v273_v13 = vmul.f32 %v647_v10, %v246_v21 }
  0xdd   :  { %v286_v40 = vadd.f32 %v273_v13, %v204_v38 }
  0xdf   :  { %v349_v23 = vpop.permute.xlu1 %348  ;;  %v299_v51 = vmax.f32 %v286_v40, 0.0 }
  0xe0   :  { %v387_v24 = vmul.f32 %v349_v23, %v296_v47 }
  0xe2   :  { %v399_v25 = vadd.f32 %v398_v18, %v387_v24 }
  0xe4   :  { %v250_v26 = vpop.permute.xlu1 %249  ;;  %v400_v27 = vadd.f32 %v399_v25, %v388_v48 }
  0xe5   :  { %v274_v36 = vmul.f32 %v647_v10, %v250_v26  ;;  %v413_v10 = vstv %s700_s4 }
  0xe7   :  { %v287_v41 = vadd.f32 %v274_v36, %v205_v39 }
  0xe9   :  { %v188_v31 = vpop.permute.xlu1 %187  ;;  %v300_v57 = vmax.f32 %v287_v41, 0.0 }
  0xea   :  { %v206_v49 = vadd.f32 %v188_v31, %v128_v50 }
  0xeb   :  { %v391_v1 = vmul.f32 %v369_v60, %v300_v57 }
  0xec   :  { %v288_v56 = vadd.f32 %v275_v53, %v206_v49 }
  0xed   :  { %v359_v37 = vpop.permute.xlu1 %358 }
  0xee   :  { %v389_v55 = vmul.f32 %v359_v37, %v298_v42  ;;  %v301_v5 = vmax.f32 %v288_v56, 0.0 }
  0xf0   :  { %v401_v62 = vadd.f32 %v400_v27, %v389_v55 }
  0xf1   :  { %v193_v44 = vpop.permute.xlu1 %192 }
  0xf2   :  { %v207_v58 = vadd.f32 %v193_v44, %v129_v52 }
  0xf4   :  { %v289_v4 = vadd.f32 %v276_v8, %v207_v58 }
  0xf5   :  { %v364_v3 = vpop.permute.xlu1 %363 }
  0xf6   :  { %v390_v63 = vmul.f32 %v364_v3, %v299_v51  ;;  %v302_v46 = vmax.f32 %v289_v4, 0.0 }
  0xf8   :  { %v402_v0 = vadd.f32 %v401_v62, %v390_v63 }
  0xf9   :  { %v374_v6 = vpop.permute.xlu1 %373 }
  0xfa   :  { %v392_v7 = vmul.f32 %v374_v6, %v301_v5  ;;  %v403_v54 = vadd.f32 %v402_v0, %v391_v1 }
  0xfc   :  { %v404_v9 = vadd.f32 %v403_v54, %v392_v7 }
  0xfd   :  { %v379_v11 = vpop.permute.xlu1 %378 }
  0xfe   :  { %v393_v2 = vmul.f32 %v379_v11, %v302_v46 }
 0x100   :  { %v405_v12 = vadd.f32 %v404_v9, %v393_v2 }
 0x102   :  { %v406_v45 = vrot.slane %v405_v12, 4 }
 0x104   :  { %v407_v14 = vadd.f32 %v406_v45, %v405_v12 }
 0x106   :  { %v408_v15 = vrot.slane %v407_v14, 2 }
 0x108   :  { %v409_v16 = vadd.f32 %v408_v15, %v407_v14 }
 0x10a   :  { %v410_v59 = vrot.slane %v409_v16, 1 }
 0x10c   :  { %v411_v17 = vadd.f32 %v410_v59, %v409_v16 }
 0x10e   :  { %v414_v18 = vadd.f32 %v413_v10, %v411_v17 }
 0x110   :  { %v415_v19 = vand.u32 2147483647, %v414_v18  ;;  %vm422_vm0 = vcmp.ge.f32.partialorder %v414_v18, 0.0 }
 0x112   :  { %v416_v20 = vsub.f32 0.0, %v415_v19 }
 0x114   :  { %v417_v21 = vmul.f32 1.442695, %v416_v20 }
 0x116   :  { %448 = vpow2.f32 %v417_v21 }
 0x123   :  { %v449_v22 = vpop.eup %448 }
 0x124   :  { %v419_v47 = vadd.f32 1.0, %v449_v22 }
 0x126   :  { %450 = vrcp.f32 %v419_v47 }
 0x133   :  { %v451_v23 = vpop.eup %450 }
 0x134   :  { %v421_v24 = vmul.f32 %v451_v23, %v449_v22 }
 0x136   :  { %v423_v48 = vsub.f32 1.0, %v421_v24 }
 0x138   :  { %v424_v25 = vsel %vm422_vm0, %v423_v48, %v421_v24 }
 0x139   :  { %425 = vst [vmem:[%s701_s5] sm:$0x1] %v424_v25 }

</bundles_post_ra>
